<compile_context>
chip_gen: v6e
topology: v6e:2x2x1
jax: 0.10.0
libtpu: 0.0.40
codegen_flags: <defaults>
</compile_context>

<pallas_src>
import jax
import jax.numpy as jnp
from jax.experimental import pallas as pl
from jax.experimental.pallas import tpu as pltpu


def _round_up(x, m):
    return ((x + m - 1) // m) * m


def _cdiv(a, b):
    return (a + b - 1) // b


def _choose_tile(B, block_b_max):
    """Pick a batch tile: as large as possible (<= block_b_max), multiple of 8.

    When B is large enough, keep at least 2 grid steps so v7x's 2 TensorCores
    both get work (neutral on v5e/v6e, which have a single TC).
    """
    n = max(1, _cdiv(B, block_b_max))
    if n < 2 and B >= 256:
        n = 2
    return _round_up(_cdiv(B, n), 8)


def gating_kernel(x_ref, w1_ref, b1_ref, w2_ref, b2_ref, out_ref):
    """One batch tile: softmax(relu(x @ w1 + b1) @ w2 + b2) over padded experts,
    with the unpadded expert slice stored to out_ref."""
    # Cast activations to the weight dtype in-kernel (free when weights are f32;
    # when use_bf16=True this keeps the MXU on its native bf16 path without an
    # extra wrapper-side HBM pass).
    x = x_ref[...].astype(w1_ref.dtype)

    # ---- Linear 1 + ReLU: MXU matmul with f32 accumulation, f32 epilogue. ----
    h = jnp.dot(x, w1_ref[...], preferred_element_type=jnp.float32)
    h = jnp.maximum(h + b1_ref[...], 0.0)

    # ---- Linear 2 over the lane-dense, padded expert dimension. ----
    logits = jnp.dot(h.astype(w2_ref.dtype), w2_ref[...],
                     preferred_element_type=jnp.float32)
    logits = logits + b2_ref[...]            # padded expert columns carry -1e30 (f32)

    # ---- Softmax (f32, exact division so rows sum to 1). ----
    m = jnp.max(logits, axis=-1, keepdims=True)
    e = jnp.exp(logits - m)                  # exp(-1e30 - m) == 0 for padded experts
    s = jnp.sum(e, axis=-1, keepdims=True)
    probs = e / s

    # Store only the real experts (out_ref's last dim == E, unpadded).
    E = out_ref.shape[1]
    out_ref[...] = probs[:, :E].astype(out_ref.dtype)


def prepare_gating_params(w1, b1, w2, b2, *, use_bf16=False):
    """One-time weight prep — pad experts to a 128-lane multiple and optionally
    cast matmul weights to bf16.  Call once and cache (keeps the padding/casts
    out of the per-call hot path)."""
    H = w1.shape[1]
    E = w2.shape[1]
    e_pad = _round_up(E, 128)
    if e_pad != E:
        w2 = jnp.pad(w2, ((0, 0), (0, e_pad - E)))
        # Padded expert columns get a huge negative bias -> probability ~0.
        b2 = jnp.pad(b2.reshape(1, E), ((0, 0), (0, e_pad - E)),
                     constant_values=-1e30)
    if use_bf16:
        w1 = w1.astype(jnp.bfloat16)
        w2 = w2.astype(jnp.bfloat16)
    # Biases MUST stay float32: b2 carries the -1e30 padded-expert masking value
    # and both biases are added in the f32 accumulator epilogue.
    b1 = b1.reshape(1, H).astype(jnp.float32)
    b2 = b2.reshape(1, e_pad).astype(jnp.float32)
    return (w1, b1, w2, b2), E


def gating_network(x, params, num_experts, *, block_b=1024, out_dtype=jnp.float32):
    """softmax(relu(x @ w1 + b1) @ w2 + b2, axis=-1) as one Pallas kernel.

    x      : (B, D_in) f32
    params : output of prepare_gating_params (padded/cast weights)
    Note: block_b up to ~2048 is safe on v6e/v7x; keep <=1024 on v5e (16 MiB
    scoped-VMEM default) or set pltpu.CompilerParams(vmem_limit_bytes=...).
    """
    w1, b1, w2, b2 = params
    B, d_in = x.shape
    H = w1.shape[1]
    e_pad = w2.shape[1]
    E = num_experts

    tb = _choose_tile(B, block_b)
    grid = (pl.cdiv(B, tb),)

    return pl.pallas_call(
        gating_kernel,
        out_shape=jax.ShapeDtypeStruct((B, E), out_dtype),
        grid=grid,
        in_specs=[
            # x streamed / double-buffered; ragged last block is read-clamped
            # (garbage rows are discarded by the masked output writeback).
            pl.BlockSpec((tb, d_in), lambda i: (i, 0)),
            pl.BlockSpec((d_in, H), lambda i: (0, 0)),   # w1: VMEM-resident
            pl.BlockSpec((1, H), lambda i: (0, 0)),      # b1: VMEM-resident
            pl.BlockSpec((H, e_pad), lambda i: (0, 0)),  # w2: VMEM-resident
            pl.BlockSpec((1, e_pad), lambda i: (0, 0)),  # b2: VMEM-resident
        ],
        # Unpadded expert store: last dim equals the full array dim (legal even
        # when E < 128); cuts output HBM traffic vs. a 128-lane padded store.
        out_specs=pl.BlockSpec((tb, E), lambda i: (i, 0)),
        compiler_params=pltpu.CompilerParams(
            # Independent batch tiles: shard grid steps across v7x's 2 TCs.
            dimension_semantics=("parallel",),
        ),
    )(x, w1, b1, w2, b2)


def reference(x, w1, b1, w2, b2):
    h = jnp.maximum(x @ w1 + b1, 0.0)
    logits = h @ w2 + b2
    return jax.nn.softmax(logits, axis=-1)


if __name__ == "__main__":
    key = jax.random.PRNGKey(0)
    B, D_IN, HIDDEN, EXPERTS = 8, 32, 512, 8

    k_x, k_w1, k_b1, k_w2, k_b2, k_x2 = jax.random.split(key, 6)

    x = jax.random.normal(k_x, (B, D_IN), dtype=jnp.float32)

    # Deterministic "PyTorch-style" uniform(-1/sqrt(fan_in), 1/sqrt(fan_in)) init.
    lim1 = 1.0 / (D_IN ** 0.5)
    w1 = jax.random.uniform(k_w1, (D_IN, HIDDEN), jnp.float32, -lim1, lim1)
    b1 = jax.random.uniform(k_b1, (1, HIDDEN), jnp.float32, -lim1, lim1)
    lim2 = 1.0 / (HIDDEN ** 0.5)
    w2 = jax.random.uniform(k_w2, (HIDDEN, EXPERTS), jnp.float32, -lim2, lim2)
    b2 = jax.random.uniform(k_b2, (1, EXPERTS), jnp.float32, -lim2, lim2)

    ref = reference(x, w1, b1, w2, b2)

    # ---- f32 path (exact softmax division -> tight tolerance). ----
    params_f32, n_experts = prepare_gating_params(w1, b1, w2, b2)
    out = jax.block_until_ready(gating_network(x, params_f32, n_experts))
    assert out.shape == (B, EXPERTS)
    assert jnp.allclose(out, ref, atol=1e-4, rtol=1e-4), "f32 mismatch vs reference"
    assert jnp.allclose(jnp.sum(out, axis=-1), 1.0, atol=1e-5), "rows must sum to 1"

    # ---- bf16 matmul-weight path (v6e/v7x-oriented); x cast in-kernel. ----
    params_bf16, _ = prepare_gating_params(w1, b1, w2, b2, use_bf16=True)
    out_bf16 = jax.block_until_ready(gating_network(x, params_bf16, n_experts))
    assert jnp.allclose(out_bf16, ref, atol=2e-2, rtol=2e-2), "bf16 mismatch vs reference"
    assert jnp.allclose(jnp.sum(out_bf16, axis=-1), 1.0, atol=1e-3), "rows must sum to 1"

    # ---- ragged multi-step grid (B not a multiple of tb; no wrapper padding). ----
    B2 = 40
    x2 = jax.random.normal(k_x2, (B2, D_IN), dtype=jnp.float32)
    ref2 = reference(x2, w1, b1, w2, b2)
    out2 = jax.block_until_ready(
        gating_network(x2, params_f32, n_experts, block_b=16))
    assert out2.shape == (B2, EXPERTS)
    assert jnp.allclose(out2, ref2, atol=1e-4, rtol=1e-4), "ragged-grid mismatch"

    print("KERNEL_OK")
</pallas_src>

<mosaic_0001>
module attributes {stable_mosaic.version = 11 : i64} {
  func.func @gating_kernel(%arg0: i32, %arg1: memref<8x32xf32, #tpu.memory_space<vmem>>, %arg2: memref<32x512xf32, #tpu.memory_space<vmem>>, %arg3: memref<1x512xf32, #tpu.memory_space<vmem>>, %arg4: memref<512x128xf32, #tpu.memory_space<vmem>>, %arg5: memref<1x128xf32, #tpu.memory_space<vmem>>, %arg6: memref<8x8xf32, #tpu.memory_space<vmem>>) attributes {dimension_semantics = [#tpu.dimension_semantics<parallel>], iteration_bounds = array<i64: 1>, scalar_prefetch = 0 : i64, scratch_operands = 0 : i64, tpu.core_type = #tpu.core_type<tc>, window_params = [{transform_indices = @transform_0, window_bounds = array<i64: 8, 32>}, {pipeline_mode = #tpu.pipeline_mode<synchronous>, transform_indices = @transform_1, window_bounds = array<i64: 32, 512>}, {pipeline_mode = #tpu.pipeline_mode<synchronous>, transform_indices = @transform_2, window_bounds = array<i64: 1, 512>}, {pipeline_mode = #tpu.pipeline_mode<synchronous>, transform_indices = @transform_3, window_bounds = array<i64: 512, 128>}, {pipeline_mode = #tpu.pipeline_mode<synchronous>, transform_indices = @transform_4, window_bounds = array<i64: 1, 128>}, {transform_indices = @transform_5, window_bounds = array<i64: 8, 8>}]} {
    %c0 = arith.constant 0 : index
    %c0_0 = arith.constant 0 : index
    %0 = vector.load %arg1[%c0, %c0_0] : memref<8x32xf32, #tpu.memory_space<vmem>>, vector<8x32xf32>
    %c0_1 = arith.constant 0 : index
    %c0_2 = arith.constant 0 : index
    %1 = vector.load %arg2[%c0_1, %c0_2] : memref<32x512xf32, #tpu.memory_space<vmem>>, vector<32x512xf32>
    %cst = arith.constant dense<0.000000e+00> : vector<8x512xf32>
    %2 = tpu.matmul %0, %1, %cst {dimension_numbers = #tpu.dot_dimension_numbers<[1], [0], [0], [1], [0, 0, 1, 1], [], []>} : vector<8x32xf32>, vector<32x512xf32>, vector<8x512xf32> -> vector<8x512xf32>
    %c0_3 = arith.constant 0 : index
    %c0_4 = arith.constant 0 : index
    %3 = vector.load %arg3[%c0_3, %c0_4] : memref<1x512xf32, #tpu.memory_space<vmem>>, vector<1x512xf32>
    %4 = vector.broadcast %3 : vector<1x512xf32> to vector<8x512xf32>
    %5 = arith.addf %2, %4 : vector<8x512xf32>
    %cst_5 = arith.constant 0.000000e+00 : f32
    %6 = vector.broadcast %cst_5 : f32 to vector<8x512xf32>
    %7 = arith.maximumf %5, %6 : vector<8x512xf32>
    %c0_6 = arith.constant 0 : index
    %c0_7 = arith.constant 0 : index
    %8 = vector.load %arg4[%c0_6, %c0_7] : memref<512x128xf32, #tpu.memory_space<vmem>>, vector<512x128xf32>
    %cst_8 = arith.constant dense<0.000000e+00> : vector<8x128xf32>
    %9 = tpu.matmul %7, %8, %cst_8 {dimension_numbers = #tpu.dot_dimension_numbers<[1], [0], [0], [1], [0, 0, 1, 1], [], []>} : vector<8x512xf32>, vector<512x128xf32>, vector<8x128xf32> -> vector<8x128xf32>
    %c0_9 = arith.constant 0 : index
    %c0_10 = arith.constant 0 : index
    %10 = vector.load %arg5[%c0_9, %c0_10] : memref<1x128xf32, #tpu.memory_space<vmem>>, vector<1x128xf32>
    %11 = vector.broadcast %10 : vector<1x128xf32> to vector<8x128xf32>
    %12 = arith.addf %9, %11 : vector<8x128xf32>
    %cst_11 = arith.constant dense<0xFF800000> : vector<8xf32>
    %13 = vector.multi_reduction <maximumf>, %12, %cst_11 [1] : vector<8x128xf32> to vector<8xf32>
    %14 = vector.shape_cast %13 : vector<8xf32> to vector<8x1xf32>
    %15 = vector.broadcast %14 : vector<8x1xf32> to vector<8x128xf32>
    %16 = arith.subf %12, %15 : vector<8x128xf32>
    %17 = math.exp %16 : vector<8x128xf32>
    %cst_12 = arith.constant dense<0.000000e+00> : vector<8xf32>
    %18 = vector.multi_reduction <add>, %17, %cst_12 [1] : vector<8x128xf32> to vector<8xf32>
    %19 = vector.shape_cast %18 : vector<8xf32> to vector<8x1xf32>
    %20 = vector.broadcast %19 : vector<8x1xf32> to vector<8x128xf32>
    %21 = arith.divf %17, %20 : vector<8x128xf32>
    %22 = vector.extract_strided_slice %21 {offsets = [0, 0], sizes = [8, 8], strides = [1, 1]} : vector<8x128xf32> to vector<8x8xf32>
    %c0_13 = arith.constant 0 : index
    %c0_14 = arith.constant 0 : index
    %23 = vector.load %arg6[%c0_13, %c0_14] : memref<8x8xf32, #tpu.memory_space<vmem>>, vector<8x8xf32>
    tpu.vector_store %arg6[%c0_13, %c0_14], %22 {strides = array<i32>} : memref<8x8xf32, #tpu.memory_space<vmem>>, vector<8x8xf32>,
    return
  }
  func.func @transform_0(%arg0: i32) -> (i32, i32) {
    %c0_i32 = arith.constant 0 : i32
    %c0_i32_0 = arith.constant 0 : i32
    return %arg0, %c0_i32 : i32, i32
  }
  func.func @transform_1(%arg0: i32) -> (i32, i32) {
    %c0_i32 = arith.constant 0 : i32
    %c0_i32_0 = arith.constant 0 : i32
    %c0_i32_1 = arith.constant 0 : i32
    return %c0_i32, %c0_i32_0 : i32, i32
  }
  func.func @transform_2(%arg0: i32) -> (i32, i32) {
    %c0_i32 = arith.constant 0 : i32
    %c0_i32_0 = arith.constant 0 : i32
    %c0_i32_1 = arith.constant 0 : i32
    return %c0_i32, %c0_i32_0 : i32, i32
  }
  func.func @transform_3(%arg0: i32) -> (i32, i32) {
    %c0_i32 = arith.constant 0 : i32
    %c0_i32_0 = arith.constant 0 : i32
    %c0_i32_1 = arith.constant 0 : i32
    return %c0_i32, %c0_i32_0 : i32, i32
  }
  func.func @transform_4(%arg0: i32) -> (i32, i32) {
    %c0_i32 = arith.constant 0 : i32
    %c0_i32_0 = arith.constant 0 : i32
    %c0_i32_1 = arith.constant 0 : i32
    return %c0_i32, %c0_i32_0 : i32, i32
  }
  func.func @transform_5(%arg0: i32) -> (i32, i32) {
    %c0_i32 = arith.constant 0 : i32
    %c0_i32_0 = arith.constant 0 : i32
    return %arg0, %c0_i32 : i32, i32
  }
}

</mosaic_0001>

<bundles_post_ra>
// kernel: tpu_custom_call.1
= control target key start
LH: loop header
LB: loop body
LE: loop exit
PB: predicated region body
PF: predicated region fallthrough
CT: control target
= control target key end

     0   :  { %10 = vsyncpa [#allocation3], 0  ;;  %s753_s0 = inlined_call_operand.hbm [shape: f32[8,32], index: 0, kind: input, shape index: {}]   ;;  %s754_s1 = inlined_call_operand.hbm [shape: f32[32,512], index: 1, kind: input, shape index: {}]   ;;  %s755_s2 = inlined_call_operand.hbm [shape: f32[1,512], index: 2, kind: input, shape index: {}]   ;;  %s756_s3 = inlined_call_operand.hbm [shape: f32[512,128], index: 3, kind: input, shape index: {}]   ;;  %s757_s4 = inlined_call_operand.vmem [shape: f32[1,128], index: 4, kind: input, shape index: {}]   ;;  %s758_s5 = inlined_call_operand.hbm [shape: f32[8,8], index: 5, kind: output, shape index: {}]  }
   0x1   :  { %11 = vsyncpa [#allocation6], 0 }
   0x2   :  { %12 = vsyncpa [#allocation9], 0 }
   0x3   :  { %13 = vsyncpa [#allocation4], 0  ;;  %s695_s18 = smov [#allocation5]  }
   0x4   :  { %s29_s19 = sshll.u32 %s695_s18, 4  ;;  %s30_s19 = int_to_ptr.vmem [resolvable:$true] %s29_s19 }
   0x5   :  { %s595_s20 = scalar_lea.vmem %s30_s19, 2048  ;;  %p600_p1 = scmp.lt.s32.totalorder %s30_s19, %s30_s19 }
   0x6   :  { %p596_p0 = scmp.ne.s32.totalorder %s30_s19, %s595_s20  ;;  %p601_p2 = scmp.lt.s32.totalorder %s595_s20, %s595_s20 }
   0x8   :  { %p602_p3 = por %p601_p2, %p600_p1 }
   0xa   :  { %p603_p4 = pnand %p602_p3, %p596_p0 }
   0xc   :  { %606 = shalt.err (!%p603_p4)
}
   0xd   :  { %s696_s21 = smov 512   ;;  %s697_s22 = smov 32  }
   0xe   :  { %35 = dma.hbm_to_vmem [thread:$0]  %s754_s1, 2048, %s30_s19, [#allocation6], %s696_s21, %s696_s21, %s697_s22  }
   0xf   :  { %s698_s25 = smov [#allocation2]   ;;  %s699_s27 = smov [#allocation7]  }
  0x10   :  { %s20_s26 = sshll.u32 %s698_s25, 4  ;;  %s42_s28 = sshll.u32 %s699_s27, 4  ;;  %s21_s26 = int_to_ptr.vmem [resolvable:$true] %s20_s26  ;;  %s43_s28 = int_to_ptr.vmem [resolvable:$true] %s42_s28 }
  0x11   :  { %s615_s29 = scalar_lea.vmem %s21_s26, 128  ;;  %p620_p6 = scmp.lt.s32.totalorder %s21_s26, %s21_s26 }
  0x12   :  { %p616_p5 = scmp.ne.s32.totalorder %s21_s26, %s615_s29  ;;  %p621_p7 = scmp.lt.s32.totalorder %s615_s29, %s615_s29 }
  0x14   :  { %p622_p8 = por %p621_p7, %p620_p6 }
  0x16   :  { %p623_p9 = pnand %p622_p8, %p616_p5 }
  0x18   :  { %626 = shalt.err (!%p623_p9)
}
  0x19   :  { %23 = dma.hbm_to_vmem [thread:$0]  %s753_s0, 128, %s21_s26, [#allocation3]  }
  0x1a   :  { %s635_s7 = scalar_lea.vmem %s43_s28, 64  ;;  %p640_p11 = scmp.lt.s32.totalorder %s43_s28, %s43_s28 }
  0x1b   :  { %p636_p10 = scmp.ne.s32.totalorder %s43_s28, %s635_s7  ;;  %p641_p12 = scmp.lt.s32.totalorder %s635_s7, %s635_s7 }
  0x1d   :  { %p642_p13 = por %p641_p12, %p640_p11 }
  0x1f   :  { %p643_p0 = pnand %p642_p13, %p636_p10 }
  0x21   :  { %646 = shalt.err (!%p643_p0)
}
  0x22   :  { %45 = dma.hbm_to_vmem [thread:$0]  %s755_s2, 64, %s43_s28, [#allocation6]  }
  0x23   :  { %s700_s9 = smov [#allocation8]  }
  0x24   :  { %s51_s10 = sshll.u32 %s700_s9, 4  ;;  %s52_s10 = int_to_ptr.vmem [resolvable:$true] %s51_s10 }
  0x25   :  { %s655_s11 = scalar_lea.vmem %s52_s10, 8192  ;;  %p660_p2 = scmp.lt.s32.totalorder %s52_s10, %s52_s10 }
  0x26   :  { %p656_p1 = scmp.ne.s32.totalorder %s52_s10, %s655_s11  ;;  %p661_p3 = scmp.lt.s32.totalorder %s655_s11, %s655_s11 }
  0x28   :  { %p662_p4 = por %p661_p3, %p660_p2 }
  0x2a   :  { %p663_p5 = pnand %p662_p4, %p656_p1 }
  0x2c   :  { %666 = shalt.err (!%p663_p5)
}
  0x2d   :  { %s701_s0 = smov 128   ;;  %s702_s12 = smov 8  }
  0x2e   :  { %57 = dma.hbm_to_vmem [thread:$0]  %s756_s3, 8192, %s52_s10, [#allocation9], %s701_s0, %s701_s0, %s702_s12  }
  0x2f   :  { %687 = dma.done.wait [#allocation3], 128  }
  0x30   :  { %688 = vsyncadd [#allocation3], 4294967168 }
  0x31   :  { %689 = dma.done.wait [#allocation6], 2112  }
  0x32   :  { %690 = vsyncadd [#allocation6], 4294965184 }
  0x33   :  { %691 = dma.done.wait [#allocation9], 8192  }
  0x34   :  { %692 = vsyncadd [#allocation9], 4294959104  ;;  %v703_v0 = vmov 0.0   ;;  %v86_v1 = vld [vmem:[#allocation5 + $0x68] sm:$0xff]  ;;  %v88_v2 = vld [vmem:[#allocation5 + $0x78] sm:$0xff]  ;;  %vm111_vm0 = vcmask 261120  }
  0x35   :  { %179 = vmatprep.mubr.f32.mxu0 %v703_v0  ;;  %250 = vmatprep.mubr.f32.mxu1 %v703_v0  ;;  %v85_v3 = vld [vmem:[#allocation5 + $0x60] sm:$0xff]  ;;  %v87_v4 = vld [vmem:[#allocation5 + $0x70] sm:$0xff]  ;;  %v82_v5 = vld [vmem:[#allocation5 + $0x48] sm:$0xff]  ;;  %s704_s15 = smov [#allocation10]   ;;  %vm481_vm1 = vcmask 64512  }
  0x36   :  { %139 = vmatprep.subr.mxu0 %v86_v1  ;;  %210 = vmatprep.subr.mxu1 %v88_v2  ;;  %v84_v6 = vld [vmem:[#allocation5 + $0x58] sm:$0xff]  ;;  %v81_v7 = vld [vmem:[#allocation5 + $0x40] sm:$0xff]  ;;  %v83_v8 = vld [vmem:[#allocation5 + $0x50] sm:$0xff]  ;;  %s489_s16 = sshll.u32 %s704_s15, 4  ;;  %s490_s16 = int_to_ptr.vmem [resolvable:$true] %s489_s16 }
  0x37   :  { %140 = vmatpush1.msra.mxu0 %v85_v3  ;;  %211 = vmatpush1.msra.mxu1 %v87_v4  ;;  %v78_v9 = vld [vmem:[#allocation5 + $0x28] sm:$0xff]  ;;  %v80_v10 = vld [vmem:[#allocation5 + $0x38] sm:$0xff]  ;;  %v77_v11 = vld [vmem:[#allocation5 + $0x20] sm:$0xff]  ;;  %p672_p7 = scmp.lt.s32.totalorder %s490_s16, %s490_s16 }
  0x38   :  { %141 = vmatprep.subr.mxu0 %v82_v5  ;;  %212 = vmatprep.subr.mxu1 %v84_v6  ;;  %v79_v12 = vld [vmem:[#allocation5 + $0x30] sm:$0xff]  ;;  %v74_v13 = vld [vmem:[#allocation5 + $0x8] sm:$0xff]  ;;  %v76_v14 = vld [vmem:[#allocation5 + $0x18] sm:$0xff] }
  0x39   :  { %142 = vmatpush1.msra.mxu0 %v81_v7  ;;  %213 = vmatpush1.msra.mxu1 %v83_v8  ;;  %v73_v15 = vld [vmem:[#allocation5] sm:$0xff]  ;;  %v75_v16 = vld [vmem:[#allocation5 + $0x10] sm:$0xff]  ;;  %v72_v17 = vld [vmem:[#allocation2] sm:$0xff] }
  0x3a   :  { %143 = vmatprep.subr.mxu0 %v78_v9  ;;  %214 = vmatprep.subr.mxu1 %v80_v10  ;;  %v292_v18 = vld [vmem:[#allocation8 + $0xf8] sm:$0xff]  ;;  %v291_v22 = vld [vmem:[#allocation8 + $0xf0] sm:$0xff]  ;;  %v290_v26 = vld [vmem:[#allocation8 + $0xe8] sm:$0xff] }
  0x3b   :  { %144 = vmatpush1.msra.mxu0 %v77_v11  ;;  %215 = vmatpush1.msra.mxu1 %v79_v12  ;;  %v324_v19 = vld [vmem:[#allocation8 + $0x1f8] sm:$0xff]  ;;  %v323_v23 = vld [vmem:[#allocation8 + $0x1f0] sm:$0xff]  ;;  %v322_v27 = vld [vmem:[#allocation8 + $0x1e8] sm:$0xff] }
  0x3c   :  { %145 = vmatprep.subr.mxu0 %v74_v13  ;;  %216 = vmatprep.subr.mxu1 %v76_v14  ;;  %v276_v20 = vld [vmem:[#allocation8 + $0x78] sm:$0xff]  ;;  %v275_v24 = vld [vmem:[#allocation8 + $0x70] sm:$0xff]  ;;  %v274_v28 = vld [vmem:[#allocation8 + $0x68] sm:$0xff] }
  0x3d   :  { %146 = vmatpush1.msra.mxu0 %v73_v15  ;;  %217 = vmatpush1.msra.mxu1 %v75_v16  ;;  %v308_v21 = vld [vmem:[#allocation8 + $0x178] sm:$0xff]  ;;  %v307_v25 = vld [vmem:[#allocation8 + $0x170] sm:$0xff]  ;;  %v306_v29 = vld [vmem:[#allocation8 + $0x168] sm:$0xff] }
  0x3e   :  { %500 = vmatmul.mubr.msk.f32.vlgmr.msra.gmra.mxu0 %vm111_vm0, %v72_v17  ;;  %501 = vmatmul.mubr.msk.f32.vlgmr.msra.gmra.mxu1 %vm111_vm0, %v72_v17  ;;  %v289_v30 = vld [vmem:[#allocation8 + $0xe0] sm:$0xff]  ;;  %v288_v34 = vld [vmem:[#allocation8 + $0xd8] sm:$0xff]  ;;  %v287_v38 = vld [vmem:[#allocation8 + $0xd0] sm:$0xff] }
  0x3f   :  { %503 = vmatprep.subr.mxu0 %v292_v18  ;;  %538 = vmatprep.subr.mxu1 %v324_v19  ;;  %v321_v31 = vld [vmem:[#allocation8 + $0x1e0] sm:$0xff]  ;;  %v320_v35 = vld [vmem:[#allocation8 + $0x1d8] sm:$0xff]  ;;  %v319_v39 = vld [vmem:[#allocation8 + $0x1d0] sm:$0xff]  ;;  %v91_v18 = vlaneseq }
  0x40   :  { %504 = vmatpush3.msra.mxu0 %v276_v20  ;;  %539 = vmatpush3.msra.mxu1 %v308_v21  ;;  %v273_v32 = vld [vmem:[#allocation8 + $0x60] sm:$0xff]  ;;  %v272_v36 = vld [vmem:[#allocation8 + $0x58] sm:$0xff]  ;;  %v271_v40 = vld [vmem:[#allocation8 + $0x50] sm:$0xff] }
  0x41   :  { %505 = vmatprep.subr.mxu0 %v291_v22  ;;  %540 = vmatprep.subr.mxu1 %v323_v23  ;;  %v305_v33 = vld [vmem:[#allocation8 + $0x160] sm:$0xff]  ;;  %v304_v37 = vld [vmem:[#allocation8 + $0x158] sm:$0xff]  ;;  %v303_v41 = vld [vmem:[#allocation8 + $0x150] sm:$0xff]  ;;  %v92_v19 = vshrl.u32 %v91_v18, 7 }
  0x42   :  { %506 = vmatpush3.msra.mxu0 %v275_v24  ;;  %541 = vmatpush3.msra.mxu1 %v307_v25  ;;  %v286_v42 = vld [vmem:[#allocation8 + $0xc8] sm:$0xff]  ;;  %v285_v46 = vld [vmem:[#allocation8 + $0xc0] sm:$0xff]  ;;  %v284_v50 = vld [vmem:[#allocation8 + $0xb8] sm:$0xff] }
  0x43   :  { %507 = vmatprep.subr.mxu0 %v290_v26  ;;  %542 = vmatprep.subr.mxu1 %v322_v27  ;;  %v318_v43 = vld [vmem:[#allocation8 + $0x1c8] sm:$0xff]  ;;  %v317_v47 = vld [vmem:[#allocation8 + $0x1c0] sm:$0xff]  ;;  %v316_v51 = vld [vmem:[#allocation8 + $0x1b8] sm:$0xff]  ;;  %v101_v20 = vsub.s32 2, %v92_v19  ;;  %v93_v21 = vsub.s32 0, %v92_v19  ;;  %v97_v23 = vsub.s32 1, %v92_v19 }
  0x44   :  { %508 = vmatpush3.msra.mxu0 %v274_v28  ;;  %543 = vmatpush3.msra.mxu1 %v306_v29  ;;  %v270_v44 = vld [vmem:[#allocation8 + $0x48] sm:$0xff]  ;;  %v269_v48 = vld [vmem:[#allocation8 + $0x40] sm:$0xff]  ;;  %v268_v52 = vld [vmem:[#allocation8 + $0x38] sm:$0xff]  ;;  %v105_v24 = vsub.s32 3, %v92_v19 }
  0x45   :  { %509 = vmatprep.subr.mxu0 %v289_v30  ;;  %544 = vmatprep.subr.mxu1 %v321_v31  ;;  %v302_v45 = vld [vmem:[#allocation8 + $0x148] sm:$0xff]  ;;  %v301_v49 = vld [vmem:[#allocation8 + $0x140] sm:$0xff]  ;;  %v300_v53 = vld [vmem:[#allocation8 + $0x138] sm:$0xff] }
  0x46   :  { %510 = vmatpush3.msra.mxu0 %v273_v32  ;;  %545 = vmatpush3.msra.mxu1 %v305_v33  ;;  %v283_v54 = vld [vmem:[#allocation8 + $0xb0] sm:$0xff]  ;;  %v282_v58 = vld [vmem:[#allocation8 + $0xa8] sm:$0xff]  ;;  %v281_v62 = vld [vmem:[#allocation8 + $0xa0] sm:$0xff] }
  0x47   :  { %511 = vmatprep.subr.mxu0 %v288_v34  ;;  %546 = vmatprep.subr.mxu1 %v320_v35  ;;  %v315_v55 = vld [vmem:[#allocation8 + $0x1b0] sm:$0xff]  ;;  %v314_v59 = vld [vmem:[#allocation8 + $0x1a8] sm:$0xff]  ;;  %v313_v63 = vld [vmem:[#allocation8 + $0x1a0] sm:$0xff] }
  0x48   :  { %512 = vmatpush3.msra.mxu0 %v272_v36  ;;  %547 = vmatpush3.msra.mxu1 %v304_v37  ;;  %v267_v56 = vld [vmem:[#allocation8 + $0x30] sm:$0xff]  ;;  %v266_v60 = vld [vmem:[#allocation8 + $0x28] sm:$0xff]  ;;  %v265_v0 = vld [vmem:[#allocation8 + $0x20] sm:$0xff] }
  0x49   :  { %513 = vmatprep.subr.mxu0 %v287_v38  ;;  %548 = vmatprep.subr.mxu1 %v319_v39  ;;  %v299_v57 = vld [vmem:[#allocation8 + $0x130] sm:$0xff]  ;;  %v298_v61 = vld [vmem:[#allocation8 + $0x128] sm:$0xff]  ;;  %v297_v1 = vld [vmem:[#allocation8 + $0x120] sm:$0xff] }
  0x4a   :  { %514 = vmatpush3.msra.mxu0 %v271_v40  ;;  %549 = vmatpush3.msra.mxu1 %v303_v41  ;;  %v280_v2 = vld [vmem:[#allocation8 + $0x98] sm:$0xff]  ;;  %v279_v6 = vld [vmem:[#allocation8 + $0x90] sm:$0xff]  ;;  %v278_v10 = vld [vmem:[#allocation8 + $0x88] sm:$0xff] }
  0x4b   :  { %515 = vmatprep.subr.mxu0 %v286_v42  ;;  %550 = vmatprep.subr.mxu1 %v318_v43  ;;  %v312_v3 = vld [vmem:[#allocation8 + $0x198] sm:$0xff]  ;;  %v311_v7 = vld [vmem:[#allocation8 + $0x190] sm:$0xff]  ;;  %v310_v11 = vld [vmem:[#allocation8 + $0x188] sm:$0xff] }
  0x4c   :  { %516 = vmatpush3.msra.mxu0 %v270_v44  ;;  %551 = vmatpush3.msra.mxu1 %v302_v45  ;;  %v264_v4 = vld [vmem:[#allocation8 + $0x18] sm:$0xff]  ;;  %v263_v8 = vld [vmem:[#allocation8 + $0x10] sm:$0xff]  ;;  %v262_v12 = vld [vmem:[#allocation8 + $0x8] sm:$0xff] }
  0x4d   :  { %517 = vmatprep.subr.mxu0 %v285_v46  ;;  %552 = vmatprep.subr.mxu1 %v317_v47  ;;  %v296_v5 = vld [vmem:[#allocation8 + $0x118] sm:$0xff]  ;;  %v295_v9 = vld [vmem:[#allocation8 + $0x110] sm:$0xff]  ;;  %v294_v13 = vld [vmem:[#allocation8 + $0x108] sm:$0xff] }
  0x4e   :  { %518 = vmatpush3.msra.mxu0 %v269_v48  ;;  %553 = vmatpush3.msra.mxu1 %v301_v49  ;;  %v277_v14 = vld [vmem:[#allocation8 + $0x80] sm:$0xff]  ;;  %v89_v22 = vld [vmem:[#allocation7] sm:$0xf]  ;;  %v502_v43 = vld [vmem:[%s757_s4] ss:$0 sm:$0xff]  ;;  %s667_s4 = scalar_lea.vmem %s490_s16, 128 }
  0x4f   :  { %519 = vmatprep.subr.mxu0 %v284_v50  ;;  %554 = vmatprep.subr.mxu1 %v316_v51  ;;  %v309_v15 = vld [vmem:[#allocation8 + $0x180] sm:$0xff]  ;;  %v102_v25 = vrot.slane %v89_v22, %v101_v20  ;;  %v94_v26 = vrot.slane %v89_v22, %v93_v21  ;;  %v98_v27 = vrot.slane %v89_v22, %v97_v23  ;;  %p668_p6 = scmp.ne.s32.totalorder %s490_s16, %s667_s4  ;;  %p673_p8 = scmp.lt.s32.totalorder %s667_s4, %s667_s4 }
  0x50   :  { %520 = vmatpush3.msra.mxu0 %v268_v52  ;;  %555 = vmatpush3.msra.mxu1 %v300_v53  ;;  %v261_v16 = vld [vmem:[#allocation8] sm:$0xff]  ;;  %v106_v28 = vrot.slane %v89_v22, %v105_v24 }
  0x51   :  { %521 = vmatprep.subr.mxu0 %v283_v54  ;;  %556 = vmatprep.subr.mxu1 %v315_v55  ;;  %v293_v17 = vld [vmem:[#allocation8 + $0x100] sm:$0xff]  ;;  %p674_p9 = por %p673_p8, %p672_p7 }
  0x52   :  { %522 = vmatpush3.msra.mxu0 %v267_v56  ;;  %557 = vmatpush3.msra.mxu1 %v299_v57 }
  0x53   :  { %523 = vmatprep.subr.mxu0 %v282_v58  ;;  %558 = vmatprep.subr.mxu1 %v314_v59  ;;  %p675_p10 = pnand %p674_p9, %p668_p6 }
  0x54   :  { %524 = vmatpush3.msra.mxu0 %v266_v60  ;;  %559 = vmatpush3.msra.mxu1 %v298_v61 }
  0x55   :  { %525 = vmatprep.subr.mxu0 %v281_v62  ;;  %560 = vmatprep.subr.mxu1 %v313_v63 }
  0x56   :  { %526 = vmatpush3.msra.mxu0 %v265_v0  ;;  %561 = vmatpush3.msra.mxu1 %v297_v1 }
  0x57   :  { %527 = vmatprep.subr.mxu0 %v280_v2  ;;  %562 = vmatprep.subr.mxu1 %v312_v3 }
  0x58   :  { %528 = vmatpush3.msra.mxu0 %v264_v4  ;;  %563 = vmatpush3.msra.mxu1 %v296_v5 }
  0x59   :  { %529 = vmatprep.subr.mxu0 %v279_v6  ;;  %564 = vmatprep.subr.mxu1 %v311_v7 }
  0x5a   :  { %530 = vmatpush3.msra.mxu0 %v263_v8  ;;  %565 = vmatpush3.msra.mxu1 %v295_v9 }
  0x5b   :  { %531 = vmatprep.subr.mxu0 %v278_v10  ;;  %566 = vmatprep.subr.mxu1 %v310_v11 }
  0x5c   :  { %532 = vmatpush3.msra.mxu0 %v262_v12  ;;  %567 = vmatpush3.msra.mxu1 %v294_v13 }
  0x5d   :  { %533 = vmatprep.subr.mxu0 %v277_v14  ;;  %568 = vmatprep.subr.mxu1 %v309_v15 }
  0x5e   :  { %534 = vmatpush3.msra.mxu0 %v261_v16  ;;  %569 = vmatpush3.msra.mxu1 %v293_v17 }
  0xfe   :  { %v181_v29 = vpop.f32.mrf.mxu0  ;;  %v252_v30 = vpop.f32.mrf.mxu1 }
  0xff   :  { %v253_v31 = vadd.f32 %v252_v30, %v102_v25  ;;  %v182_v32 = vadd.f32 %v181_v29, %v94_v26 }
 0x100   :  { %v183_v33 = vpop.f32.mrf.mxu0  ;;  %v254_v34 = vpop.f32.mrf.mxu1 }
 0x101   :  { %v184_v35 = vadd.f32 %v183_v33, %v98_v27  ;;  %v255_v36 = vadd.f32 %v254_v34, %v106_v28  ;;  %v259_v37 = vmax.f32 %v253_v31, 0.0  ;;  %v257_v40 = vmax.f32 %v182_v32, 0.0 }
 0x103   :  { %v258_v38 = vmax.f32 %v184_v35, 0.0  ;;  %v260_v39 = vmax.f32 %v255_v36, 0.0 }
 0x105   :  { %396 = vmatprep.mubr.f32.mxu0 %v258_v38  ;;  %466 = vmatprep.mubr.f32.mxu1 %v260_v39 }
 0x106   :  { %397 = vmatmul.mubr.f32.vlgmr.msra.gmra.mxu0 %v257_v40  ;;  %467 = vmatmul.mubr.f32.vlgmr.msra.gmra.mxu1 %v259_v37 }
 0x1c6   :  { %v535_v41 = vpop.f32.mrf.mxu0  ;;  %v570_v42 = vpop.f32.mrf.mxu1 }
 0x1c8   :  { %v536_v44 = vpop.f32.mrf.mxu0  ;;  %v571_v45 = vpop.f32.mrf.mxu1 }
 0x1c9   :  { %v537_v46 = vadd.f32 %v536_v44, %v535_v41  ;;  %v572_v48 = vadd.f32 %v571_v45, %v570_v42 }
 0x1cb   :  { %v399_v47 = vadd.f32 %v537_v46, %v502_v43 }
 0x1cd   :  { %v469_v49 = vadd.f32 %v572_v48, %v399_v47 }
 0x1cf   :  { %472 = vmax.xlane.f32.xlu0 %v469_v49 }
 0x258   :  { %v473_v50 = vpop.xlane.xlu0 %472 }
 0x259   :  { %v474_v51 = vsub.f32 %v469_v49, %v473_v50 }
 0x25b   :  { %v475_v52 = vmul.f32 1.442695, %v474_v51 }
 0x25d   :  { %583 = vpow2.f32 %v475_v52 }
 0x26a   :  { %v584_v53 = vpop.eup %583 }
 0x26b   :  { %477 = vadd.xlane.f32.xlu0 %v584_v53 }
 0x2f4   :  { %v478_v54 = vpop.xlane.xlu0 %477 }
 0x2f5   :  { %585 = vrcp.f32 %v478_v54 }
 0x302   :  { %v586_v55 = vpop.eup %585 }
 0x303   :  { %v480_v56 = vmul.f32 %v586_v55, %v584_v53 }
 0x305   :  { %482 = vst.msk [vmem:[#allocation10] sm:$0xff] %vm481_vm1, %v480_v56 }
 0x306   :  { %678 = shalt.err (!%p675_p10)
}
 0x307   :  { %492 = dma.vmem_to_hbm [thread:$0]  %s490_s16, 128, %s758_s5, [#allocation4]  }
 0x308   :  { %693 = dma.done.wait [#allocation4], 128  }
 0x309   :  { %694 = vsyncadd [#allocation4], 4294967168 }
 0x30a   :  { %496 = vsyncpa [#allocation3], 1 }
 0x30b   :  { %497 = vsyncpa [#allocation6], 1 }
 0x30c   :  { %498 = vsyncpa [#allocation9], 1 }
 0x30d   :  { %499 = vsyncpa [#allocation4], 1 }

</bundles_post_ra>
